<compile_context>
chip_gen: v7x
topology: tpu7x:2x2x1
jax: 0.10.0
libtpu: 0.0.40
codegen_flags: <defaults>
</compile_context>

<pallas_src>
import functools

import jax
import jax.numpy as jnp
from jax import lax
from jax.experimental import pallas as pl
from jax.experimental.pallas import tpu as pltpu

LN_EPS = 1e-5


def _round_up(x, m):
    return ((x + m - 1) // m) * m


# ----------------------------------------------------------------------------
# Fused head kernel: LayerNorm(cat(t, v)) -> Linear -> ReLU, no concat.
# ----------------------------------------------------------------------------
def _fused_head_kernel(t_ref, v_ref, wt_ref, wv_ref, cs_ref, b_ref, o_ref, *, inv_d2):
    t = t_ref[...]                                    # [tm, D] bf16
    v = v_ref[...]                                    # [tm, D] bf16

    # One-pass LN statistics over the virtual concatenation [t | v] (width 2D),
    # accumulated in f32:  mean = (sum t + sum v)/2D, var = E[x^2] - mean^2.
    t32 = t.astype(jnp.float32)
    v32 = v.astype(jnp.float32)
    s1 = jnp.sum(t32, axis=-1, keepdims=True) + jnp.sum(v32, axis=-1, keepdims=True)
    s2 = (jnp.sum(t32 * t32, axis=-1, keepdims=True)
          + jnp.sum(v32 * v32, axis=-1, keepdims=True))
    mean = s1 * inv_d2                                # [tm, 1]
    var = s2 * inv_d2 - mean * mean
    inv = lax.rsqrt(var + LN_EPS)                     # EUP slot

    # Split matmul on the *raw* bf16 halves (MXU, f32 accumulation).
    z = jnp.dot(t, wt_ref[...], preferred_element_type=jnp.float32)
    z = z + jnp.dot(v, wv_ref[...], preferred_element_type=jnp.float32)

    # Apply the LN normalization post-matmul, add folded bias, ReLU:
    #   ((x - mean)*inv) @ W' + b' == inv*(x @ W') - (inv*mean)*colsum(W') + b'
    z = z * inv - (inv * mean) * cs_ref[...] + b_ref[...]
    o_ref[...] = jnp.maximum(z, 0.0).astype(o_ref.dtype)


def fused_prepool_head(set_emb_text, set_emb_video, gamma, beta, w, b):
    """Pallas wrapper: folds the LN affine into the Linear, splits the weight
    into text/video halves, grids over rows (ragged last block), and only
    lane-pads the output when in_dim is not already 128-aligned."""
    n, d = set_emb_text.shape
    assert set_emb_video.shape == (n, d)
    d2 = 2 * d

    # --- Fold LayerNorm affine into the Linear (host-side, once) -------------
    #   y = xn*gamma + beta ; z = y @ W + b
    #   => z = xn @ (gamma[:, None] * W) + (b + beta @ W)
    w_f = w.astype(jnp.float32)                                       # [2D, D]
    w_fold = gamma.astype(jnp.float32)[:, None] * w_f                 # [2D, D]
    b_fold = b.astype(jnp.float32) + beta.astype(jnp.float32) @ w_f   # [D]

    # --- Lane-pad the output dim only when not already 128-aligned -----------
    dp = d if d % 128 == 0 else _round_up(d, 128)
    wt = w_fold[:d].astype(jnp.bfloat16)                              # [D, D]
    wv = w_fold[d:].astype(jnp.bfloat16)                              # [D, D]
    if dp != d:
        wt = jnp.zeros((d, dp), jnp.bfloat16).at[:, :d].set(wt)
        wv = jnp.zeros((d, dp), jnp.bfloat16).at[:, :d].set(wv)
        b_fold = jnp.zeros((dp,), jnp.float32).at[:d].set(b_fold)
    # colsum over the bf16-rounded folded weight so the post-matmul mean
    # correction exactly matches the MXU accumulation.
    csum = (jnp.sum(wt.astype(jnp.float32), axis=0)
            + jnp.sum(wv.astype(jnp.float32), axis=0))                # [Dp]
    cs = csum[None, :]                                                # [1, Dp]
    bp = b_fold[None, :]                                              # [1, Dp]

    # --- Per-generation VMEM budget -------------------------------------------
    try:
        info = pltpu.get_tpu_info()
        vmem_phys = int(getattr(info, "vmem_capacity_bytes", 64 * 1024 * 1024))
    except Exception:
        vmem_phys = 64 * 1024 * 1024           # v7x-safe fallback
    budget = max(16 * 1024 * 1024, int(vmem_phys * 0.40))

    def vmem_bytes(tm_):
        in_b = 2 * 2 * tm_ * d * 2             # t, v: double-buffered bf16
        w_b = 2 * 2 * d * dp * 2               # wt, wv: resident, counted 2-buffered bf16
        cb_b = 2 * 2 * dp * 4                  # colsum & bias: 2-buffered f32
        out_b = 2 * tm_ * dp * 2               # bf16 output, double-buffered
        return in_b + w_b + cb_b + out_b

    # --- Row tile: multiple of 8, never (much) larger than N, largest that
    #     fits the budget.  Ragged last block is masked by the pipeline, so no
    #     host-side zero-fill of the inputs is needed. ---------------------------
    cap = _round_up(max(n, 8), 8)
    tm = 8
    for cand in (512, 384, 256, 128, 64, 32, 16, 8):
        c = min(cand, cap)
        if vmem_bytes(c) <= budget:
            tm = c
            break
    # TODO(synk): if even tm=8 exceeds the budget (huge in_dim), add a K-axis
    #             grid with an f32 VMEM accumulator instead of relying on the
    #             raised vmem_limit below.

    vmem_limit = int(min(vmem_phys, max(32 * 1024 * 1024, vmem_bytes(tm) + (4 << 20))))

    t = set_emb_text.astype(jnp.bfloat16)
    v = set_emb_video.astype(jnp.bfloat16)

    grid = (pl.cdiv(n, tm),)
    out = pl.pallas_call(
        functools.partial(_fused_head_kernel, inv_d2=1.0 / float(d2)),
        out_shape=jax.ShapeDtypeStruct((n, dp), jnp.bfloat16),
        grid=grid,
        in_specs=[
            pl.BlockSpec((tm, d), lambda i: (i, 0)),   # text half  (row-tiled)
            pl.BlockSpec((tm, d), lambda i: (i, 0)),   # video half (row-tiled)
            pl.BlockSpec((d, dp), lambda i: (0, 0)),   # W' top half    (resident)
            pl.BlockSpec((d, dp), lambda i: (0, 0)),   # W' bottom half (resident)
            pl.BlockSpec((1, dp), lambda i: (0, 0)),   # colsum(W')     (resident)
            pl.BlockSpec((1, dp), lambda i: (0, 0)),   # folded bias    (resident)
        ],
        out_specs=pl.BlockSpec((tm, dp), lambda i: (i, 0)),
        compiler_params=pltpu.CompilerParams(
            dimension_semantics=("parallel",),          # megacore shard on v7x
            vmem_limit_bytes=vmem_limit,
        ),
    )(t, v, wt, wv, cs, bp)

    return out if dp == d else out[:, :d]


# ----------------------------------------------------------------------------
# Plain-JAX glue: deterministic stand-in encoders + parameter construction.
# ----------------------------------------------------------------------------
def simple_prepool_net(videos, labels, params):
    """videos: [N, C, H, W] (NCHW, like PyTorch); labels: [N, L, text_emb]."""
    # SetTextEncoder stand-in: mean over tokens, then linear -> in_dim.
    txt = jnp.mean(labels, axis=1)                              # [N, text_emb]
    set_emb_text = txt @ params["w_text"] + params["b_text"]    # [N, in_dim]

    # SetVideoEncoder stand-in: global average pool over H,W, linear -> in_dim.
    vid = jnp.mean(videos, axis=(2, 3))                         # [N, C]
    set_emb_video = vid @ params["w_vid"] + params["b_vid"]     # [N, in_dim]

    # Emit the intermediates in bf16 (halves the kernel-input HBM traffic;
    # XLA fuses the cast into the projection matmuls above).
    return fused_prepool_head(
        set_emb_text.astype(jnp.bfloat16),
        set_emb_video.astype(jnp.bfloat16),
        params["ln_gamma"], params["ln_beta"],
        params["w_emb"], params["b_emb"],
    )


def init_params(key, *, text_emb, vid_channels, in_dim):
    ks = jax.random.split(key, 6)
    params = {
        # stand-in encoder projections
        "w_text": jax.random.normal(ks[0], (text_emb, in_dim), jnp.float32) * 0.1,
        "b_text": jnp.zeros((in_dim,), jnp.float32),
        "w_vid": jax.random.normal(ks[1], (vid_channels, in_dim), jnp.float32) * 0.1,
        "b_vid": jnp.zeros((in_dim,), jnp.float32),
        # nn.LayerNorm(in_dim * 2) — perturbed away from (1, 0) so the
        # affine-folding path is actually exercised by the check below.
        "ln_gamma": 1.0 + 0.1 * jax.random.normal(ks[2], (2 * in_dim,), jnp.float32),
        "ln_beta": 0.1 * jax.random.normal(ks[3], (2 * in_dim,), jnp.float32),
        # nn.Linear(in_dim * 2, in_dim); stored as [2*in_dim, in_dim] (x @ W + b)
        "w_emb": jax.random.normal(ks[4], (2 * in_dim, in_dim), jnp.float32) * 0.1,
        "b_emb": jax.random.normal(ks[5], (in_dim,), jnp.float32) * 0.01,
    }
    return params


def _reference(videos, labels, params):
    """Pure-f32 JAX reference for the same forward (sanity check)."""
    txt = jnp.mean(labels, axis=1) @ params["w_text"] + params["b_text"]
    vid = jnp.mean(videos, axis=(2, 3)) @ params["w_vid"] + params["b_vid"]
    x = jnp.concatenate([txt, vid], axis=1)
    mean = jnp.mean(x, axis=-1, keepdims=True)
    var = jnp.mean((x - mean) ** 2, axis=-1, keepdims=True)
    xn = (x - mean) / jnp.sqrt(var + LN_EPS)
    y = xn * params["ln_gamma"] + params["ln_beta"]
    z = y @ params["w_emb"] + params["b_emb"]
    return jnp.maximum(z, 0.0)


if __name__ == "__main__":
    key = jax.random.PRNGKey(0)
    k_vid, k_lab, k_par = jax.random.split(key, 3)

    N, C, H, W = 8, 3, 16, 16        # set size, video channels, spatial
    L, TEXT_EMB = 8, 32              # tokens per label, text embedding dim
    IN_DIM = 32                      # set_text_encoder.pre_pooling_fn.output_size

    videos = jax.random.normal(k_vid, (N, C, H, W), jnp.float32)
    labels = jax.random.normal(k_lab, (N, L, TEXT_EMB), jnp.float32)
    params = init_params(k_par, text_emb=TEXT_EMB, vid_channels=C, in_dim=IN_DIM)

    out = simple_prepool_net(videos, labels, params)
    out = jax.block_until_ready(out)

    ref = jax.block_until_ready(_reference(videos, labels, params))
    assert out.shape == (N, IN_DIM)
    # Kernel runs bf16 activations/weights through the MXU (f32 accumulation),
    # applies LN post-matmul, and emits a bf16 output — hence the loose tol.
    assert jnp.allclose(out.astype(jnp.float32), ref, atol=5e-2, rtol=5e-2), \
        "mismatch vs JAX reference"

    print("KERNEL_OK")
</pallas_src>

<mosaic_0001>
module attributes {stable_mosaic.version = 11 : i64} {
  func.func @_fused_head_kernel(%arg0: i32, %arg1: memref<8x32xbf16, #tpu.memory_space<vmem>>, %arg2: memref<8x32xbf16, #tpu.memory_space<vmem>>, %arg3: memref<32x128xbf16, #tpu.memory_space<vmem>>, %arg4: memref<32x128xbf16, #tpu.memory_space<vmem>>, %arg5: memref<1x128xf32, #tpu.memory_space<vmem>>, %arg6: memref<1x128xf32, #tpu.memory_space<vmem>>, %arg7: memref<8x128xbf16, #tpu.memory_space<vmem>>) attributes {dimension_semantics = [#tpu.dimension_semantics<parallel>], iteration_bounds = array<i64: 1>, scalar_prefetch = 0 : i64, scratch_operands = 0 : i64, tpu.core_type = #tpu.core_type<tc>, window_params = [{transform_indices = @transform_0, window_bounds = array<i64: 8, 32>}, {transform_indices = @transform_1, window_bounds = array<i64: 8, 32>}, {pipeline_mode = #tpu.pipeline_mode<synchronous>, transform_indices = @transform_2, window_bounds = array<i64: 32, 128>}, {pipeline_mode = #tpu.pipeline_mode<synchronous>, transform_indices = @transform_3, window_bounds = array<i64: 32, 128>}, {pipeline_mode = #tpu.pipeline_mode<synchronous>, transform_indices = @transform_4, window_bounds = array<i64: 1, 128>}, {pipeline_mode = #tpu.pipeline_mode<synchronous>, transform_indices = @transform_5, window_bounds = array<i64: 1, 128>}, {transform_indices = @transform_6, window_bounds = array<i64: 8, 128>}]} {
    %c0 = arith.constant 0 : index
    %c0_0 = arith.constant 0 : index
    %0 = vector.load %arg1[%c0, %c0_0] : memref<8x32xbf16, #tpu.memory_space<vmem>>, vector<8x32xbf16>
    %c0_1 = arith.constant 0 : index
    %c0_2 = arith.constant 0 : index
    %1 = vector.load %arg2[%c0_1, %c0_2] : memref<8x32xbf16, #tpu.memory_space<vmem>>, vector<8x32xbf16>
    %2 = arith.extf %0 : vector<8x32xbf16> to vector<8x32xf32>
    %3 = arith.extf %1 : vector<8x32xbf16> to vector<8x32xf32>
    %cst = arith.constant dense<0.000000e+00> : vector<8xf32>
    %4 = vector.multi_reduction <add>, %2, %cst [1] : vector<8x32xf32> to vector<8xf32>
    %5 = vector.shape_cast %4 : vector<8xf32> to vector<8x1xf32>
    %cst_3 = arith.constant dense<0.000000e+00> : vector<8xf32>
    %6 = vector.multi_reduction <add>, %3, %cst_3 [1] : vector<8x32xf32> to vector<8xf32>
    %7 = vector.shape_cast %6 : vector<8xf32> to vector<8x1xf32>
    %8 = arith.addf %5, %7 : vector<8x1xf32>
    %9 = arith.mulf %2, %2 : vector<8x32xf32>
    %cst_4 = arith.constant dense<0.000000e+00> : vector<8xf32>
    %10 = vector.multi_reduction <add>, %9, %cst_4 [1] : vector<8x32xf32> to vector<8xf32>
    %11 = vector.shape_cast %10 : vector<8xf32> to vector<8x1xf32>
    %12 = arith.mulf %3, %3 : vector<8x32xf32>
    %cst_5 = arith.constant dense<0.000000e+00> : vector<8xf32>
    %13 = vector.multi_reduction <add>, %12, %cst_5 [1] : vector<8x32xf32> to vector<8xf32>
    %14 = vector.shape_cast %13 : vector<8xf32> to vector<8x1xf32>
    %15 = arith.addf %11, %14 : vector<8x1xf32>
    %cst_6 = arith.constant 1.562500e-02 : f32
    %16 = vector.broadcast %cst_6 : f32 to vector<8x1xf32>
    %17 = arith.mulf %8, %16 : vector<8x1xf32>
    %cst_7 = arith.constant 1.562500e-02 : f32
    %18 = vector.broadcast %cst_7 : f32 to vector<8x1xf32>
    %19 = arith.mulf %15, %18 : vector<8x1xf32>
    %20 = arith.mulf %17, %17 : vector<8x1xf32>
    %21 = arith.subf %19, %20 : vector<8x1xf32>
    %cst_8 = arith.constant 9.99999974E-6 : f32
    %22 = vector.broadcast %cst_8 : f32 to vector<8x1xf32>
    %23 = arith.addf %21, %22 : vector<8x1xf32>
    %24 = math.rsqrt %23 : vector<8x1xf32>
    %c0_9 = arith.constant 0 : index
    %c0_10 = arith.constant 0 : index
    %25 = vector.load %arg3[%c0_9, %c0_10] : memref<32x128xbf16, #tpu.memory_space<vmem>>, vector<32x128xbf16>
    %cst_11 = arith.constant dense<0.000000e+00> : vector<8x128xf32>
    %26 = tpu.matmul %0, %25, %cst_11 {dimension_numbers = #tpu.dot_dimension_numbers<[1], [0], [0], [1], [0, 0, 1, 1], [], []>} : vector<8x32xbf16>, vector<32x128xbf16>, vector<8x128xf32> -> vector<8x128xf32>
    %c0_12 = arith.constant 0 : index
    %c0_13 = arith.constant 0 : index
    %27 = vector.load %arg4[%c0_12, %c0_13] : memref<32x128xbf16, #tpu.memory_space<vmem>>, vector<32x128xbf16>
    %cst_14 = arith.constant dense<0.000000e+00> : vector<8x128xf32>
    %28 = tpu.matmul %1, %27, %cst_14 {dimension_numbers = #tpu.dot_dimension_numbers<[1], [0], [0], [1], [0, 0, 1, 1], [], []>} : vector<8x32xbf16>, vector<32x128xbf16>, vector<8x128xf32> -> vector<8x128xf32>
    %29 = arith.addf %26, %28 : vector<8x128xf32>
    %30 = vector.broadcast %24 : vector<8x1xf32> to vector<8x128xf32>
    %31 = arith.mulf %29, %30 : vector<8x128xf32>
    %32 = arith.mulf %24, %17 : vector<8x1xf32>
    %c0_15 = arith.constant 0 : index
    %c0_16 = arith.constant 0 : index
    %33 = vector.load %arg5[%c0_15, %c0_16] : memref<1x128xf32, #tpu.memory_space<vmem>>, vector<1x128xf32>
    %34 = vector.broadcast %32 : vector<8x1xf32> to vector<8x128xf32>
    %35 = vector.broadcast %33 : vector<1x128xf32> to vector<8x128xf32>
    %36 = arith.mulf %34, %35 : vector<8x128xf32>
    %37 = arith.subf %31, %36 : vector<8x128xf32>
    %c0_17 = arith.constant 0 : index
    %c0_18 = arith.constant 0 : index
    %38 = vector.load %arg6[%c0_17, %c0_18] : memref<1x128xf32, #tpu.memory_space<vmem>>, vector<1x128xf32>
    %39 = vector.broadcast %38 : vector<1x128xf32> to vector<8x128xf32>
    %40 = arith.addf %37, %39 : vector<8x128xf32>
    %cst_19 = arith.constant 0.000000e+00 : f32
    %41 = vector.broadcast %cst_19 : f32 to vector<8x128xf32>
    %42 = arith.maximumf %40, %41 : vector<8x128xf32>
    %43 = arith.truncf %42 : vector<8x128xf32> to vector<8x128xbf16>
    %c0_20 = arith.constant 0 : index
    %c0_21 = arith.constant 0 : index
    %44 = vector.load %arg7[%c0_20, %c0_21] : memref<8x128xbf16, #tpu.memory_space<vmem>>, vector<8x128xbf16>
    tpu.vector_store %arg7[%c0_20, %c0_21], %43 {strides = array<i32>} : memref<8x128xbf16, #tpu.memory_space<vmem>>, vector<8x128xbf16>,
    return
  }
  func.func @transform_0(%arg0: i32) -> (i32, i32) {
    %c0_i32 = arith.constant 0 : i32
    %c0_i32_0 = arith.constant 0 : i32
    return %arg0, %c0_i32 : i32, i32
  }
  func.func @transform_1(%arg0: i32) -> (i32, i32) {
    %c0_i32 = arith.constant 0 : i32
    %c0_i32_0 = arith.constant 0 : i32
    return %arg0, %c0_i32 : i32, i32
  }
  func.func @transform_2(%arg0: i32) -> (i32, i32) {
    %c0_i32 = arith.constant 0 : i32
    %c0_i32_0 = arith.constant 0 : i32
    %c0_i32_1 = arith.constant 0 : i32
    return %c0_i32, %c0_i32_0 : i32, i32
  }
  func.func @transform_3(%arg0: i32) -> (i32, i32) {
    %c0_i32 = arith.constant 0 : i32
    %c0_i32_0 = arith.constant 0 : i32
    %c0_i32_1 = arith.constant 0 : i32
    return %c0_i32, %c0_i32_0 : i32, i32
  }
  func.func @transform_4(%arg0: i32) -> (i32, i32) {
    %c0_i32 = arith.constant 0 : i32
    %c0_i32_0 = arith.constant 0 : i32
    %c0_i32_1 = arith.constant 0 : i32
    return %c0_i32, %c0_i32_0 : i32, i32
  }
  func.func @transform_5(%arg0: i32) -> (i32, i32) {
    %c0_i32 = arith.constant 0 : i32
    %c0_i32_0 = arith.constant 0 : i32
    %c0_i32_1 = arith.constant 0 : i32
    return %c0_i32, %c0_i32_0 : i32, i32
  }
  func.func @transform_6(%arg0: i32) -> (i32, i32) {
    %c0_i32 = arith.constant 0 : i32
    %c0_i32_0 = arith.constant 0 : i32
    return %arg0, %c0_i32 : i32, i32
  }
}

</mosaic_0001>

<bundles_post_ra>
// kernel: tpu_custom_call.1
= control target key start
LH: loop header
LB: loop body
LE: loop exit
PB: predicated region body
PF: predicated region fallthrough
CT: control target
= control target key end

     0   :  { %11 = vsyncpa [#allocation3], 0  ;;  %s534_s0 = inlined_call_operand.hbm [shape: bf16[8,32], index: 0, kind: input, shape index: {}]   ;;  %s535_s1 = inlined_call_operand.hbm [shape: bf16[8,32], index: 1, kind: input, shape index: {}]   ;;  %s536_s2 = inlined_call_operand.hbm [shape: bf16[32,128], index: 2, kind: input, shape index: {}]   ;;  %s537_s3 = inlined_call_operand.hbm [shape: bf16[32,128], index: 3, kind: input, shape index: {}]   ;;  %s538_s4 = inlined_call_operand.vmem [shape: f32[1,128], index: 4, kind: input, shape index: {}]   ;;  %s539_s5 = inlined_call_operand.vmem [shape: f32[1,128], index: 5, kind: input, shape index: {}]   ;;  %s540_s6 = inlined_call_operand.hbm [shape: bf16[8,128], index: 6, kind: output, shape index: {}]  }
   0x1   :  { %12 = vsyncpa [#allocation6], 0 }
   0x2   :  { %13 = vsyncpa [#allocation9], 0 }
   0x3   :  { %14 = vsyncpa [#allocation4], 0  ;;  %s424_s21 = smov [#allocation5]   ;;  %s425_s23 = smov [#allocation2]  }
   0x4   :  { %s31_s22 = sshll.u32 %s424_s21, 4  ;;  %s21_s24 = sshll.u32 %s425_s23, 4  ;;  %s32_s22 = int_to_ptr.vmem [resolvable:$true] %s31_s22  ;;  %s22_s24 = int_to_ptr.vmem [resolvable:$true] %s21_s24 }
   0x5   :  { %s306_s27 = scalar_lea.hbm %s535_s1, 64 }
   0x6   :  { %p307_p0 = scmp.ne.s32.totalorder %s535_s1, %s306_s27  ;;  %p310_p1 = scmp.lt.u32.totalorder %s306_s27, %s535_s1 }
   0x8   :  { %p312_p2 = pnand %p310_p1, %p307_p0 }
   0xa   :  { %315 = shalt.err (!%p312_p2)
}
   0xb   :  { %s316_s8 = scalar_lea.vmem %s32_s22, 64  ;;  %p321_p4 = scmp.lt.s32.totalorder %s32_s22, %s32_s22 }
   0xc   :  { %p317_p3 = scmp.ne.s32.totalorder %s32_s22, %s316_s8  ;;  %p322_p5 = scmp.lt.s32.totalorder %s316_s8, %s316_s8 }
   0xe   :  { %p323_p6 = por %p322_p5, %p321_p4 }
  0x10   :  { %p324_p7 = pnand %p323_p6, %p317_p3 }
  0x12   :  { %327 = shalt.err (!%p324_p7)
}
  0x13   :  { %34 = dma.hbm_to_vmem [thread:$0]  %s535_s1, 64, %s32_s22, [#allocation6]  }
  0x14   :  { %s328_s13 = scalar_lea.hbm %s534_s0, 64 }
  0x15   :  { %p329_p8 = scmp.ne.s32.totalorder %s534_s0, %s328_s13  ;;  %p332_p9 = scmp.lt.u32.totalorder %s328_s13, %s534_s0 }
  0x17   :  { %p334_p10 = pnand %p332_p9, %p329_p8 }
  0x19   :  { %337 = shalt.err (!%p334_p10)
}
  0x1a   :  { %s338_s18 = scalar_lea.vmem %s22_s24, 64  ;;  %p343_p12 = scmp.lt.s32.totalorder %s22_s24, %s22_s24 }
  0x1b   :  { %p339_p11 = scmp.ne.s32.totalorder %s22_s24, %s338_s18  ;;  %p344_p13 = scmp.lt.s32.totalorder %s338_s18, %s338_s18 }
  0x1d   :  { %p345_p0 = por %p344_p13, %p343_p12 }
  0x1f   :  { %p346_p1 = pnand %p345_p0, %p339_p11 }
  0x21   :  { %349 = shalt.err (!%p346_p1)
}
  0x22   :  { %24 = dma.hbm_to_vmem [thread:$0]  %s534_s0, 64, %s22_s24, [#allocation3]  }
  0x23   :  { %s426_s20 = smov [#allocation7]   ;;  %s350_s25 = scalar_lea.hbm %s536_s2, 256 }
  0x24   :  { %s40_s21 = sshll.u32 %s426_s20, 4  ;;  %p351_p2 = scmp.ne.s32.totalorder %s536_s2, %s350_s25  ;;  %s41_s21 = int_to_ptr.vmem [resolvable:$true] %s40_s21 }
  0x25   :  { %p354_p3 = scmp.lt.u32.totalorder %s350_s25, %s536_s2 }
  0x27   :  { %p356_p4 = pnand %p354_p3, %p351_p2 }
  0x29   :  { %359 = shalt.err (!%p356_p4)
}
  0x2a   :  { %s360_s30 = scalar_lea.vmem %s41_s21, 256  ;;  %p365_p6 = scmp.lt.s32.totalorder %s41_s21, %s41_s21 }
  0x2b   :  { %p361_p5 = scmp.ne.s32.totalorder %s41_s21, %s360_s30  ;;  %p366_p7 = scmp.lt.s32.totalorder %s360_s30, %s360_s30 }
  0x2d   :  { %p367_p8 = por %p366_p7, %p365_p6 }
  0x2f   :  { %p368_p9 = pnand %p367_p8, %p361_p5 }
  0x31   :  { %371 = shalt.err (!%p368_p9)
}
  0x32   :  { %s427_s0 = smov 64   ;;  %s428_s24 = smov 4  }
  0x33   :  { %46 = dma.hbm_to_vmem [thread:$0]  %s536_s2, 256, %s41_s21, [#allocation6], %s427_s0, %s427_s0, %s428_s24  }
  0x34   :  { %s429_s9 = smov [#allocation8]   ;;  %s372_s13 = scalar_lea.hbm %s537_s3, 256 }
  0x35   :  { %s52_s10 = sshll.u32 %s429_s9, 4  ;;  %p373_p10 = scmp.ne.s32.totalorder %s537_s3, %s372_s13  ;;  %s53_s10 = int_to_ptr.vmem [resolvable:$true] %s52_s10 }
  0x36   :  { %p376_p11 = scmp.lt.u32.totalorder %s372_s13, %s537_s3 }
  0x38   :  { %p378_p12 = pnand %p376_p11, %p373_p10 }
  0x3a   :  { %381 = shalt.err (!%p378_p12)
}
  0x3b   :  { %s382_s18 = scalar_lea.vmem %s53_s10, 256  ;;  %p387_p0 = scmp.lt.s32.totalorder %s53_s10, %s53_s10 }
  0x3c   :  { %p383_p13 = scmp.ne.s32.totalorder %s53_s10, %s382_s18  ;;  %p388_p1 = scmp.lt.s32.totalorder %s382_s18, %s382_s18 }
  0x3e   :  { %p389_p2 = por %p388_p1, %p387_p0 }
  0x40   :  { %p390_p3 = pnand %p389_p2, %p383_p13 }
  0x42   :  { %393 = shalt.err (!%p390_p3)
}
  0x43   :  { %58 = dma.hbm_to_vmem [thread:$0]  %s537_s3, 256, %s53_s10, [#allocation9], %s427_s0, %s427_s0, %s428_s24  }
  0x44   :  { %416 = dma.done.wait [#allocation3], 64  }
  0x45   :  { %417 = vsyncadd [#allocation3], 4294967232 }
  0x46   :  { %418 = dma.done.wait [#allocation6], 320  }
  0x47   :  { %419 = vsyncadd [#allocation6], 4294966976 }
  0x48   :  { %420 = dma.done.wait [#allocation9], 256  }
  0x49   :  { %421 = vsyncadd [#allocation9], 4294967040  ;;  %v430_v0 = vmov 0.0   ;;  %vm431_vm0 = vmmov 0   ;;  %v300_v1 = vld [vmem:[#allocation8] sm:$0xff]   ;;  %v301_v2 = vld [vmem:[#allocation7] sm:$0xff]  }
  0x4a   :  { %274 = vmatprep.subr.bf16.mxu1 %v430_v0  ;;  %282 = vmatprep.subr.bf16.mxu0 %v430_v0  ;;  %v302_v3 = vld [vmem:[#allocation8 + $0x8] sm:$0xff]   ;;  %v303_v4 = vld [vmem:[#allocation7 + $0x8] sm:$0xff]   ;;  %vm80_vm1 = vcmask 261120   ;;  %s432_s22 = smov [#allocation10]  }
  0x4b   :  { %278 = vmatprep.mubr.msk.bf16.mxu1 %vm431_vm0, %v430_v0  ;;  %286 = vmatprep.mubr.msk.bf16.mxu0 %vm431_vm0, %v430_v0  ;;  %v77_v5 = vld [vmem:[#allocation5] sm:$0xf]  ;;  %v76_v6 = vld [vmem:[#allocation2] sm:$0xf]  ;;  %s249_s23 = sshll.u32 %s432_s22, 4  ;;  %s250_s23 = int_to_ptr.vmem [resolvable:$true] %s249_s23 }
  0x4c   :  { %275 = vmatpush3.bf16.msra.mxu1 %v300_v1  ;;  %283 = vmatpush3.bf16.msra.mxu0 %v301_v2  ;;  %v78_v7 = vunpack.c.l.bf16 %v76_v6  ;;  %v79_v8 = vunpack.c.l.bf16 %v77_v5  ;;  %v266_v30 = vld [vmem:[%s538_s4] ss:$0 sm:$0xff]  ;;  %s394_s4 = scalar_lea.vmem %s250_s23, 64  ;;  %p399_p5 = scmp.lt.s32.totalorder %s250_s23, %s250_s23 }
  0x4d   :  { %276 = vmatprep.subr.bf16.mxu1 %v430_v0  ;;  %284 = vmatprep.subr.bf16.mxu0 %v430_v0  ;;  %v267_v40 = vld [vmem:[%s539_s5] ss:$0 sm:$0xff]  ;;  %p395_p4 = scmp.ne.s32.totalorder %s250_s23, %s394_s4  ;;  %p400_p6 = scmp.lt.s32.totalorder %s394_s4, %s394_s4 }
  0x4e   :  { %v81_v9 = vsel %vm80_vm1, %v78_v7, 0.0  ;;  %v88_v10 = vmul.f32 %v78_v7, %v78_v7  ;;  %v92_v11 = vmul.f32 %v79_v8, %v79_v8  ;;  %v84_v13 = vsel %vm80_vm1, %v79_v8, 0.0 }
  0x4f   :  { %82 = vadd.xlane.f32.xlu0 %v81_v9  ;;  %p401_p7 = por %p400_p6, %p399_p5 }
  0x50   :  { %277 = vmatpush3.bf16.msra.mxu1 %v302_v3  ;;  %285 = vmatpush3.bf16.msra.mxu0 %v303_v4  ;;  %v89_v12 = vsel %vm80_vm1, %v88_v10, 0.0  ;;  %v93_v14 = vsel %vm80_vm1, %v92_v11, 0.0 }
  0x51   :  { %90 = vadd.xlane.f32.xlu1 %v89_v12  ;;  %p402_p8 = pnand %p401_p7, %p395_p4 }
  0x53   :  { %279 = vmatmul.mubr.msk.bf16.vlgmr.msra.gmra.mrb[0].mxu1 %vm80_vm1, %v77_v5  ;;  %287 = vmatmul.mubr.msk.bf16.vlgmr.msra.gmra.mrb[0].mxu0 %vm80_vm1, %v76_v6 }
  0x54   :  { %85 = vadd.xlane.f32.xlu0 %v84_v13 }
  0x55   :  { %94 = vadd.xlane.f32.xlu1 %v93_v14 }
  0xdc   :  { %v83_v15 = vpop.xlane.xlu0 %82 }
  0xde   :  { %v91_v16 = vpop.xlane.xlu1 %90 }
  0xe1   :  { %v86_v17 = vpop.xlane.xlu0 %85 }
  0xe2   :  { %v87_v18 = vadd.f32 %v86_v17, %v83_v15  ;;  %v95_v19 = vpop.xlane.xlu1 %94 }
  0xe3   :  { %v96_v21 = vadd.f32 %v95_v19, %v91_v16 }
  0xe4   :  { %v97_v20 = vmul.f32 0.015625, %v87_v18 }
  0xe5   :  { %v98_v23 = vmul.f32 0.015625, %v96_v21 }
  0xe6   :  { %v99_v22 = vmul.f32 %v97_v20, %v97_v20 }
  0xe8   :  { %v100_v24 = vsub.f32 %v98_v23, %v99_v22 }
  0xea   :  { %v101_v25 = vadd.f32 1e-05, %v100_v24 }
  0xec   :  { %304 = vrsqrt.f32 %v101_v25 }
  0xf6   :  { %v305_v26 = vpop.eup %304 }
  0xf7   :  { %v222_v28 = vmul.f32 %v305_v26, %v97_v20 }
  0xf9   :  { %v230_v38 = vmul.f32 %v266_v30, %v222_v28 }
 0x126   :  { %v160_v27 = vpop.f32.mrb[0].mxu1  ;;  %v215_v29 = vpop.f32.mrb[0].mxu0 }
 0x127   :  { %v280_v31 = vpop.f32.mrb[1].mxu1  ;;  %v216_v32 = vadd.f32 %v215_v29, %v160_v27  ;;  %v288_v33 = vpop.f32.mrb[1].mxu0 }
 0x128   :  { %v163_v34 = vpop.f32.mrb[2].mxu1  ;;  %v218_v35 = vpop.f32.mrb[2].mxu0 }
 0x129   :  { %v281_v36 = vpop.f32.mrb[3].mxu1  ;;  %v221_v37 = vmul.f32 %v305_v26, %v216_v32  ;;  %v289_v39 = vpop.f32.mrb[3].mxu0 }
 0x12b   :  { %v231_v41 = vsub.f32 %v221_v37, %v230_v38 }
 0x12d   :  { %v239_v42 = vadd.f32 %v267_v40, %v231_v41 }
 0x12f   :  { %v240_v43 = vmax.f32 %v239_v42, 0.0 }
 0x131   :  { %v241_v44 = vpack.c.bf16 %v240_v43, %v240_v43 }
 0x133   :  { %242 = vst [vmem:[#allocation10] sm:$0xf] %v241_v44 }
 0x134   :  { %405 = shalt.err (!%p402_p8)
}
 0x135   :  { %s406_s27 = scalar_lea.hbm %s540_s6, 64 }
 0x136   :  { %p407_p9 = scmp.ne.s32.totalorder %s540_s6, %s406_s27  ;;  %p410_p10 = scmp.lt.u32.totalorder %s406_s27, %s540_s6 }
 0x138   :  { %p412_p11 = pnand %p410_p10, %p407_p9 }
 0x13a   :  { %415 = shalt.err (!%p412_p11)
}
 0x13b   :  { %252 = dma.vmem_to_hbm [thread:$0]  %s250_s23, 64, %s540_s6, [#allocation4]  }
 0x13c   :  { %422 = dma.done.wait [#allocation4], 64  }
 0x13d   :  { %423 = vsyncadd [#allocation4], 4294967232 }
 0x13e   :  { %256 = vsyncpa [#allocation3], 1 }
 0x13f   :  { %257 = vsyncpa [#allocation6], 1 }
 0x140   :  { %258 = vsyncpa [#allocation9], 1 }
 0x141   :  { %259 = vsyncpa [#allocation4], 1 }

</bundles_post_ra>
